<compile_context>
chip_gen: v6e
topology: v6e:2x2x1
jax: 0.10.0
libtpu: 0.0.40
codegen_flags: <defaults>
</compile_context>

<pallas_src>
import functools

import jax
import jax.numpy as jnp
from jax.experimental import pallas as pl
from jax.experimental.pallas import tpu as pltpu


# ---------------------------------------------------------------------------
# Kernels
# ---------------------------------------------------------------------------

def _bn1d_train_kernel(x_ref, w_ref, b_ref, rm_ref, rv_ref,
                       out_ref, new_rm_ref, new_rv_ref,
                       *, eps, momentum):
    # Each grid step sees its own (N, TILE_C) feature slab; stats are
    # independent per feature column, so no cross-step state is needed.
    x = x_ref[...].astype(jnp.float32)                         # (N, TILE_C)
    n = x.shape[0]
    inv_n = 1.0 / n

    mean = jnp.sum(x, axis=0, keepdims=True) * inv_n            # (1, TILE_C)
    centered = x - mean
    var = jnp.sum(centered * centered, axis=0, keepdims=True) * inv_n

    # Fold inv_std into the weight once per tile: hot loop is one FMA per
    # element; rsqrt routes to the otherwise-idle EUP slot.
    scale = jax.lax.rsqrt(var + eps) * w_ref[...].astype(jnp.float32)
    shift = b_ref[...].astype(jnp.float32)
    out_ref[...] = (centered * scale + shift).astype(out_ref.dtype)

    # Running-stat update in f32 (the module's convention, biased variance).
    new_rm_ref[...] = momentum * rm_ref[...] + (1.0 - momentum) * mean
    new_rv_ref[...] = momentum * rv_ref[...] + (1.0 - momentum) * var


def _bn1d_eval_kernel(x_ref, w_ref, b_ref, rm_ref, rv_ref, out_ref, *, eps):
    # Hoist the per-element divide/sqrt into a per-tile scale/shift:
    #   out = x * scale + shift  (pure VPU mul+add per element).
    w = w_ref[...].astype(jnp.float32)
    b = b_ref[...].astype(jnp.float32)
    rm = rm_ref[...].astype(jnp.float32)
    rv = rv_ref[...].astype(jnp.float32)
    scale = w * jax.lax.rsqrt(rv + eps)
    shift = b - rm * scale
    out_ref[...] = (x_ref[...].astype(jnp.float32) * scale + shift).astype(out_ref.dtype)


# ---------------------------------------------------------------------------
# Tiling / compiler parameters
# ---------------------------------------------------------------------------

# Cap N * TILE_C so that (input + output) double-buffered f32 slabs stay well
# under the smallest VMEM budget (v7x: 64 MiB physical / 32 MiB scoped).
_MAX_TILE_ELEMS = 2 * 1024 * 1024  # ~8 MiB per f32 slab


def _pick_tile_c(n, c):
    """Largest multiple-of-128 divisor of C whose (N, TILE_C) slab fits the
    per-buffer VMEM budget; falls back to full C for small / odd C (block
    dims equal to the full array dims are always legal)."""
    if c % 128 == 0:
        for cand in (2048, 1024, 512, 256, 128):
            if c % cand == 0 and n * cand <= _MAX_TILE_ELEMS:
                return cand
        return 128
    return c


# "parallel" on the feature axis shards tiles across both TensorCores on v7x
# (no-op on v5e/v6e). vmem_limit_bytes lifts v5e's 16 MiB scoped default
# while staying safely under v7x's 64 MiB physical VMEM.
_COMPILER_PARAMS = pltpu.CompilerParams(
    dimension_semantics=("parallel",),
    vmem_limit_bytes=48 * 1024 * 1024,
)

# TODO(synk): for batches too large for an (N, TILE_C) slab in VMEM, add a
# trailing "arbitrary" grid axis over N that accumulates sum / sum-of-squares
# in f32 VMEM scratch (pl.when init/finalize) and apply the normalization in
# a second sweep.


# ---------------------------------------------------------------------------
# Wrappers
# ---------------------------------------------------------------------------

def batchnorm1d_train(x, weight, bias, running_mean, running_var,
                      eps=1e-5, momentum=0.001):
    """Training-mode forward. Returns (out, new_running_mean, new_running_var)."""
    n, c = x.shape
    tile_c = _pick_tile_c(n, c)
    grid = (c // tile_c,)

    w2 = weight.reshape(1, c)
    b2 = bias.reshape(1, c)
    # Running statistics are carried / updated in float32 regardless of x.dtype.
    rm2 = running_mean.reshape(1, c).astype(jnp.float32)
    rv2 = running_var.reshape(1, c).astype(jnp.float32)

    x_spec = pl.BlockSpec((n, tile_c), lambda j: (0, j))
    row_spec = pl.BlockSpec((1, tile_c), lambda j: (0, j))

    out, new_rm, new_rv = pl.pallas_call(
        functools.partial(_bn1d_train_kernel, eps=eps, momentum=momentum),
        out_shape=(
            jax.ShapeDtypeStruct((n, c), x.dtype),
            jax.ShapeDtypeStruct((1, c), jnp.float32),
            jax.ShapeDtypeStruct((1, c), jnp.float32),
        ),
        grid=grid,
        in_specs=[x_spec, row_spec, row_spec, row_spec, row_spec],
        out_specs=(x_spec, row_spec, row_spec),
        # In-place running-stat update: rm2 -> new_rm, rv2 -> new_rv.
        input_output_aliases={3: 1, 4: 2},
        compiler_params=_COMPILER_PARAMS,
    )(x, w2, b2, rm2, rv2)
    return out, new_rm.reshape(c), new_rv.reshape(c)


def batchnorm1d_eval(x, weight, bias, running_mean, running_var, eps=1e-5):
    """Eval-mode forward (uses running statistics)."""
    n, c = x.shape
    tile_c = _pick_tile_c(n, c)
    grid = (c // tile_c,)

    w2 = weight.reshape(1, c)
    b2 = bias.reshape(1, c)
    rm2 = running_mean.reshape(1, c)
    rv2 = running_var.reshape(1, c)

    x_spec = pl.BlockSpec((n, tile_c), lambda j: (0, j))
    row_spec = pl.BlockSpec((1, tile_c), lambda j: (0, j))

    return pl.pallas_call(
        functools.partial(_bn1d_eval_kernel, eps=eps),
        out_shape=jax.ShapeDtypeStruct((n, c), x.dtype),
        grid=grid,
        in_specs=[x_spec, row_spec, row_spec, row_spec, row_spec],
        out_specs=x_spec,
        compiler_params=_COMPILER_PARAMS,
    )(x, w2, b2, rm2, rv2)


# ---------------------------------------------------------------------------
# Demo / self-check
# ---------------------------------------------------------------------------

if __name__ == "__main__":
    key = jax.random.PRNGKey(0)
    N, C = 8, 32               # batch=8, num_features=32 (MLP hidden layer)
    eps, momentum = 1e-5, 0.001

    x = jax.random.normal(key, (N, C), dtype=jnp.float32)

    # Deterministic parameter init matching the module's __init__:
    weight = jnp.ones((C,), dtype=jnp.float32)
    bias = jnp.zeros((C,), dtype=jnp.float32)
    running_mean = jnp.zeros((C,), dtype=jnp.float32)
    running_var = jnp.zeros((C,), dtype=jnp.float32)   # module inits to zeros

    out, new_rm, new_rv = batchnorm1d_train(
        x, weight, bias, running_mean, running_var, eps=eps, momentum=momentum)
    jax.block_until_ready((out, new_rm, new_rv))

    # Pure-JAX reference of the module's training-mode forward.
    mean_ref = x.mean(axis=0)
    var_ref = x.var(axis=0)                           # biased (unbiased=False)
    z_ref = (x - mean_ref) / jnp.sqrt(var_ref + eps)
    out_ref = z_ref * weight + bias
    rm_ref = momentum * running_mean + (1.0 - momentum) * mean_ref
    rv_ref = momentum * running_var + (1.0 - momentum) * var_ref

    assert jnp.allclose(out, out_ref, atol=1e-4, rtol=1e-4)
    assert jnp.allclose(new_rm, rm_ref, atol=1e-6, rtol=1e-6)
    assert jnp.allclose(new_rv, rv_ref, atol=1e-6, rtol=1e-6)

    # Eval mode with the just-updated running stats.
    out_eval = batchnorm1d_eval(x, weight, bias, new_rm, new_rv, eps=eps)
    jax.block_until_ready(out_eval)
    out_eval_ref = (x - new_rm) / jnp.sqrt(new_rv + eps) * weight + bias
    assert jnp.allclose(out_eval, out_eval_ref, atol=1e-4, rtol=1e-4)

    print("KERNEL_OK")
</pallas_src>

<mosaic_0001>
module attributes {stable_mosaic.version = 11 : i64} {
  func.func @_bn1d_train_kernel(%arg0: i32, %arg1: memref<8x32xf32, #tpu.memory_space<vmem>>, %arg2: memref<1x32xf32, #tpu.memory_space<vmem>>, %arg3: memref<1x32xf32, #tpu.memory_space<vmem>>, %arg4: memref<1x32xf32, #tpu.memory_space<vmem>>, %arg5: memref<1x32xf32, #tpu.memory_space<vmem>>, %arg6: memref<8x32xf32, #tpu.memory_space<vmem>>, %arg7: memref<1x32xf32, #tpu.memory_space<vmem>>, %arg8: memref<1x32xf32, #tpu.memory_space<vmem>>) attributes {dimension_semantics = [#tpu.dimension_semantics<parallel>], iteration_bounds = array<i64: 1>, scalar_prefetch = 0 : i64, scratch_operands = 0 : i64, tpu.core_type = #tpu.core_type<tc>, window_params = [{transform_indices = @transform_0, window_bounds = array<i64: 8, 32>}, {transform_indices = @transform_1, window_bounds = array<i64: 1, 32>}, {transform_indices = @transform_2, window_bounds = array<i64: 1, 32>}, {transform_indices = @transform_3, window_bounds = array<i64: 1, 32>}, {transform_indices = @transform_4, window_bounds = array<i64: 1, 32>}, {transform_indices = @transform_5, window_bounds = array<i64: 8, 32>}, {transform_indices = @transform_6, window_bounds = array<i64: 1, 32>}, {transform_indices = @transform_7, window_bounds = array<i64: 1, 32>}]} {
    %c0 = arith.constant 0 : index
    %c0_0 = arith.constant 0 : index
    %0 = vector.load %arg1[%c0, %c0_0] : memref<8x32xf32, #tpu.memory_space<vmem>>, vector<8x32xf32>
    %cst = arith.constant dense<0.000000e+00> : vector<32xf32>
    %1 = vector.multi_reduction <add>, %0, %cst [0] : vector<8x32xf32> to vector<32xf32>
    %2 = vector.shape_cast %1 : vector<32xf32> to vector<1x32xf32>
    %cst_1 = arith.constant 1.250000e-01 : f32
    %3 = vector.broadcast %cst_1 : f32 to vector<1x32xf32>
    %4 = arith.mulf %2, %3 : vector<1x32xf32>
    %5 = vector.broadcast %4 : vector<1x32xf32> to vector<8x32xf32>
    %6 = arith.subf %0, %5 : vector<8x32xf32>
    %7 = arith.mulf %6, %6 : vector<8x32xf32>
    %cst_2 = arith.constant dense<0.000000e+00> : vector<32xf32>
    %8 = vector.multi_reduction <add>, %7, %cst_2 [0] : vector<8x32xf32> to vector<32xf32>
    %9 = vector.shape_cast %8 : vector<32xf32> to vector<1x32xf32>
    %cst_3 = arith.constant 1.250000e-01 : f32
    %10 = vector.broadcast %cst_3 : f32 to vector<1x32xf32>
    %11 = arith.mulf %9, %10 : vector<1x32xf32>
    %cst_4 = arith.constant 9.99999974E-6 : f32
    %12 = vector.broadcast %cst_4 : f32 to vector<1x32xf32>
    %13 = arith.addf %11, %12 : vector<1x32xf32>
    %14 = math.rsqrt %13 : vector<1x32xf32>
    %c0_5 = arith.constant 0 : index
    %c0_6 = arith.constant 0 : index
    %15 = vector.load %arg2[%c0_5, %c0_6] : memref<1x32xf32, #tpu.memory_space<vmem>>, vector<1x32xf32>
    %16 = arith.mulf %14, %15 : vector<1x32xf32>
    %c0_7 = arith.constant 0 : index
    %c0_8 = arith.constant 0 : index
    %17 = vector.load %arg3[%c0_7, %c0_8] : memref<1x32xf32, #tpu.memory_space<vmem>>, vector<1x32xf32>
    %18 = vector.broadcast %16 : vector<1x32xf32> to vector<8x32xf32>
    %19 = arith.mulf %6, %18 : vector<8x32xf32>
    %20 = vector.broadcast %17 : vector<1x32xf32> to vector<8x32xf32>
    %21 = arith.addf %19, %20 : vector<8x32xf32>
    %c0_9 = arith.constant 0 : index
    %c0_10 = arith.constant 0 : index
    %22 = vector.load %arg6[%c0_9, %c0_10] : memref<8x32xf32, #tpu.memory_space<vmem>>, vector<8x32xf32>
    tpu.vector_store %arg6[%c0_9, %c0_10], %21 {strides = array<i32>} : memref<8x32xf32, #tpu.memory_space<vmem>>, vector<8x32xf32>,
    %c0_11 = arith.constant 0 : index
    %c0_12 = arith.constant 0 : index
    %23 = vector.load %arg4[%c0_11, %c0_12] : memref<1x32xf32, #tpu.memory_space<vmem>>, vector<1x32xf32>
    %cst_13 = arith.constant 1.000000e-03 : f32
    %24 = vector.broadcast %cst_13 : f32 to vector<1x32xf32>
    %25 = arith.mulf %24, %23 : vector<1x32xf32>
    %cst_14 = arith.constant 9.990000e-01 : f32
    %26 = vector.broadcast %cst_14 : f32 to vector<1x32xf32>
    %27 = arith.mulf %26, %4 : vector<1x32xf32>
    %28 = arith.addf %25, %27 : vector<1x32xf32>
    %c0_15 = arith.constant 0 : index
    %c0_16 = arith.constant 0 : index
    %29 = vector.load %arg7[%c0_15, %c0_16] : memref<1x32xf32, #tpu.memory_space<vmem>>, vector<1x32xf32>
    tpu.vector_store %arg7[%c0_15, %c0_16], %28 {strides = array<i32>} : memref<1x32xf32, #tpu.memory_space<vmem>>, vector<1x32xf32>,
    %c0_17 = arith.constant 0 : index
    %c0_18 = arith.constant 0 : index
    %30 = vector.load %arg5[%c0_17, %c0_18] : memref<1x32xf32, #tpu.memory_space<vmem>>, vector<1x32xf32>
    %cst_19 = arith.constant 1.000000e-03 : f32
    %31 = vector.broadcast %cst_19 : f32 to vector<1x32xf32>
    %32 = arith.mulf %31, %30 : vector<1x32xf32>
    %cst_20 = arith.constant 9.990000e-01 : f32
    %33 = vector.broadcast %cst_20 : f32 to vector<1x32xf32>
    %34 = arith.mulf %33, %11 : vector<1x32xf32>
    %35 = arith.addf %32, %34 : vector<1x32xf32>
    %c0_21 = arith.constant 0 : index
    %c0_22 = arith.constant 0 : index
    %36 = vector.load %arg8[%c0_21, %c0_22] : memref<1x32xf32, #tpu.memory_space<vmem>>, vector<1x32xf32>
    tpu.vector_store %arg8[%c0_21, %c0_22], %35 {strides = array<i32>} : memref<1x32xf32, #tpu.memory_space<vmem>>, vector<1x32xf32>,
    return
  }
  func.func @transform_0(%arg0: i32) -> (i32, i32) {
    %c0_i32 = arith.constant 0 : i32
    %c0_i32_0 = arith.constant 0 : i32
    return %c0_i32, %arg0 : i32, i32
  }
  func.func @transform_1(%arg0: i32) -> (i32, i32) {
    %c0_i32 = arith.constant 0 : i32
    %c0_i32_0 = arith.constant 0 : i32
    return %c0_i32, %arg0 : i32, i32
  }
  func.func @transform_2(%arg0: i32) -> (i32, i32) {
    %c0_i32 = arith.constant 0 : i32
    %c0_i32_0 = arith.constant 0 : i32
    return %c0_i32, %arg0 : i32, i32
  }
  func.func @transform_3(%arg0: i32) -> (i32, i32) {
    %c0_i32 = arith.constant 0 : i32
    %c0_i32_0 = arith.constant 0 : i32
    return %c0_i32, %arg0 : i32, i32
  }
  func.func @transform_4(%arg0: i32) -> (i32, i32) {
    %c0_i32 = arith.constant 0 : i32
    %c0_i32_0 = arith.constant 0 : i32
    return %c0_i32, %arg0 : i32, i32
  }
  func.func @transform_5(%arg0: i32) -> (i32, i32) {
    %c0_i32 = arith.constant 0 : i32
    %c0_i32_0 = arith.constant 0 : i32
    return %c0_i32, %arg0 : i32, i32
  }
  func.func @transform_6(%arg0: i32) -> (i32, i32) {
    %c0_i32 = arith.constant 0 : i32
    %c0_i32_0 = arith.constant 0 : i32
    return %c0_i32, %arg0 : i32, i32
  }
  func.func @transform_7(%arg0: i32) -> (i32, i32) {
    %c0_i32 = arith.constant 0 : i32
    %c0_i32_0 = arith.constant 0 : i32
    return %c0_i32, %arg0 : i32, i32
  }
}

</mosaic_0001>

<bundles_post_ra>
// kernel: tpu_custom_call.1
= control target key start
LH: loop header
LB: loop body
LE: loop exit
PB: predicated region body
PF: predicated region fallthrough
CT: control target
= control target key end

     0   :  { %13 = vsyncpa [#allocation3], 0  ;;  %s331_s0 = inlined_call_operand.vmem [shape: f32[8,32], index: 0, kind: input, shape index: {}]   ;;  %s332_s1 = inlined_call_operand.vmem [shape: f32[1,32], index: 1, kind: input, shape index: {}]   ;;  %s333_s2 = inlined_call_operand.vmem [shape: f32[1,32], index: 2, kind: input, shape index: {}]   ;;  %s334_s3 = inlined_call_operand.hbm [shape: f32[1,32], index: 3, kind: input, shape index: {}, may-alias: {3,6}]   ;;  %s335_s4 = inlined_call_operand.hbm [shape: f32[1,32], index: 4, kind: input, shape index: {}, may-alias: {4,7}]   ;;  %s336_s5 = inlined_call_operand.hbm [shape: f32[8,32], index: 5, kind: output, shape index: {0}]   ;;  %s337_s6 = inlined_call_operand.hbm [shape: f32[1,32], index: 6, kind: output, shape index: {1}, may-alias: {3,6}]   ;;  %s338_s7 = inlined_call_operand.hbm [shape: f32[1,32], index: 7, kind: output, shape index: {2}, may-alias: {4,7}]  }
   0x1   :  { %14 = vsyncpa [#allocation6], 0 }
   0x2   :  { %15 = vsyncpa [#allocation4], 0 }
   0x3   :  { %16 = vsyncpa [#allocation9], 0  ;;  %s257_s24 = smov [#allocation2]   ;;  %s258_s26 = smov [#allocation5]  }
   0x4   :  { %s29_s25 = sshll.u32 %s257_s24, 4  ;;  %s39_s27 = sshll.u32 %s258_s26, 4  ;;  %s30_s25 = int_to_ptr.vmem [resolvable:$true] %s29_s25  ;;  %s40_s27 = int_to_ptr.vmem [resolvable:$true] %s39_s27 }
   0x5   :  { %s157_s28 = scalar_lea.vmem %s30_s25, 16  ;;  %s161_s29 = scalar_lea.vmem %s30_s25, 32 }
   0x6   :  { %p158_p0 = scmp.ne.s32.totalorder %s30_s25, %s157_s28  ;;  %p162_p1 = scmp.lt.s32.totalorder %s30_s25, %s30_s25 }
   0x7   :  { %p163_p2 = scmp.lt.s32.totalorder %s161_s29, %s157_s28 }
   0x9   :  { %p164_p3 = por %p163_p2, %p162_p1 }
   0xb   :  { %p165_p4 = pnand %p164_p3, %p158_p0 }
   0xd   :  { %168 = shalt.err (!%p165_p4)
}
   0xe   :  { %32 = dma.hbm_to_vmem [thread:$0]  %s334_s3, 16, %s30_s25, [#allocation3]  }
   0xf   :  { %s177_s9 = scalar_lea.vmem %s40_s27, 16  ;;  %s181_s10 = scalar_lea.vmem %s40_s27, 32 }
  0x10   :  { %p178_p5 = scmp.ne.s32.totalorder %s40_s27, %s177_s9  ;;  %p182_p6 = scmp.lt.s32.totalorder %s40_s27, %s40_s27 }
  0x11   :  { %p183_p7 = scmp.lt.s32.totalorder %s181_s10, %s177_s9 }
  0x13   :  { %p184_p8 = por %p183_p7, %p182_p6 }
  0x15   :  { %p185_p9 = pnand %p184_p8, %p178_p5 }
  0x17   :  { %188 = shalt.err (!%p185_p9)
}
  0x18   :  { %42 = dma.hbm_to_vmem [thread:$0]  %s335_s4, 16, %s40_s27, [#allocation6]  }
  0x19   :  { %249 = dma.done.wait [#allocation3], 16  }
  0x1a   :  { %250 = vsyncadd [#allocation3], 4294967280 }
  0x1b   :  { %251 = dma.done.wait [#allocation6], 16  }
  0x1c   :  { %252 = vsyncadd [#allocation6], 4294967280  ;;  %vm50_vm0 = vcmask 261120   ;;  %v49_v0 = vld [vmem:[%s331_s0] sm:$0xff]  ;;  %v87_v7 = vld [vmem:[#allocation2] sm:$0x1] }
  0x1d   :  { %v51_v1 = vsel %vm50_vm0, %v49_v0, 0.0  ;;  %v88_v10 = vmul.f32 0.001, %v87_v7  ;;  %s259_s3 = smov [#allocation8]   ;;  %vm91_vm1 = vcmask 253952  }
  0x1e   :  { %v52_v2 = vrot.slane %v51_v1, 4  ;;  %s114_s4 = sshll.u32 %s259_s3, 4  ;;  %s115_s4 = int_to_ptr.vmem [resolvable:$true] %s114_s4 }
  0x1f   :  { %s189_s0 = scalar_lea.vmem %s115_s4, 16  ;;  %s193_s15 = scalar_lea.vmem %s115_s4, 32 }
  0x20   :  { %v53_v3 = vadd.f32 %v52_v2, %v51_v1  ;;  %p190_p10 = scmp.ne.s32.totalorder %s115_s4, %s189_s0  ;;  %p194_p11 = scmp.lt.s32.totalorder %s115_s4, %s115_s4 }
  0x21   :  { %p195_p12 = scmp.lt.s32.totalorder %s193_s15, %s189_s0 }
  0x22   :  { %v54_v4 = vrot.slane %v53_v3, 2 }
  0x23   :  { %p196_p13 = por %p195_p12, %p194_p11 }
  0x24   :  { %v55_v5 = vadd.f32 %v54_v4, %v53_v3 }
  0x25   :  { %p197_p0 = pnand %p196_p13, %p190_p10 }
  0x26   :  { %v56_v6 = vrot.slane %v55_v5, 1 }
  0x28   :  { %v57_v8 = vadd.f32 %v56_v6, %v55_v5 }
  0x2a   :  { %v58_v9 = vmul.f32 0.125, %v57_v8 }
  0x2c   :  { %v89_v11 = vmul.f32 0.999, %v58_v9  ;;  %v59_v12 = vsub.f32 %v49_v0, %v58_v9 }
  0x2e   :  { %v90_v13 = vadd.f32 %v89_v11, %v88_v10  ;;  %v60_v14 = vmul.f32 %v59_v12, %v59_v12 }
  0x30   :  { %92 = vst.msk [vmem:[#allocation8] sm:$0x1] %vm91_vm1, %v90_v13  ;;  %v61_v15 = vsel %vm50_vm0, %v60_v14, 0.0 }
  0x31   :  { %v62_v16 = vrot.slane %v61_v15, 4 }
  0x32   :  { %200 = shalt.err (!%p197_p0)
}
  0x33   :  { %117 = dma.vmem_to_hbm [thread:$0]  %s115_s4, 16, %s337_s6, [#allocation9]   ;;  %v63_v17 = vadd.f32 %v62_v16, %v61_v15  ;;  %v93_v21 = vld [vmem:[#allocation5] sm:$0x1] }
  0x34   :  { %v94_v24 = vmul.f32 0.001, %v93_v21  ;;  %s260_s18 = smov [#allocation10]  }
  0x35   :  { %v64_v18 = vrot.slane %v63_v17, 2  ;;  %s124_s19 = sshll.u32 %s260_s18, 4  ;;  %s125_s19 = int_to_ptr.vmem [resolvable:$true] %s124_s19 }
  0x36   :  { %s209_s20 = scalar_lea.vmem %s125_s19, 16  ;;  %s213_s6 = scalar_lea.vmem %s125_s19, 32 }
  0x37   :  { %v65_v19 = vadd.f32 %v64_v18, %v63_v17  ;;  %p210_p1 = scmp.ne.s32.totalorder %s125_s19, %s209_s20  ;;  %p214_p2 = scmp.lt.s32.totalorder %s125_s19, %s125_s19 }
  0x38   :  { %p215_p3 = scmp.lt.s32.totalorder %s213_s6, %s209_s20 }
  0x39   :  { %v66_v20 = vrot.slane %v65_v19, 1 }
  0x3a   :  { %p216_p4 = por %p215_p3, %p214_p2 }
  0x3b   :  { %v67_v22 = vadd.f32 %v66_v20, %v65_v19 }
  0x3c   :  { %p217_p5 = pnand %p216_p4, %p210_p1 }
  0x3d   :  { %v68_v23 = vmul.f32 0.125, %v67_v22 }
  0x3f   :  { %v69_v25 = vadd.f32 1e-05, %v68_v23  ;;  %v95_v26 = vmul.f32 0.999, %v68_v23 }
  0x41   :  { %147 = vrsqrt.f32 %v69_v25  ;;  %v96_v27 = vadd.f32 %v95_v26, %v94_v24 }
  0x43   :  { %97 = vst.msk [vmem:[#allocation10] sm:$0x1] %vm91_vm1, %v96_v27 }
  0x44   :  { %220 = shalt.err (!%p217_p5)
}
  0x45   :  { %127 = dma.vmem_to_hbm [thread:$0]  %s125_s19, 16, %s338_s7, [#allocation9]   ;;  %v74_v28 = vlaneseq  ;;  %v71_v30 = vld [vmem:[%s332_s1] sm:$0x1] }
  0x46   :  { %v141_v35 = vld [vmem:[%s333_s2] ss:$0 sm:$0xff]  ;;  %s261_s27 = smov [#allocation7]  }
  0x47   :  { %v75_v29 = vshrl.u32 %v74_v28, 7  ;;  %s104_s28 = sshll.u32 %s261_s27, 4  ;;  %s105_s28 = int_to_ptr.vmem [resolvable:$true] %s104_s28 }
  0x48   :  { %s229_s7 = scalar_lea.vmem %s105_s28, 128  ;;  %p234_p7 = scmp.lt.s32.totalorder %s105_s28, %s105_s28 }
  0x49   :  { %v76_v31 = vsub.s32 0, %v75_v29  ;;  %p230_p6 = scmp.ne.s32.totalorder %s105_s28, %s229_s7  ;;  %p235_p8 = scmp.lt.s32.totalorder %s229_s7, %s229_s7 }
  0x4b   :  { %p236_p9 = por %p235_p8, %p234_p7 }
  0x4d   :  { %p237_p10 = pnand %p236_p9, %p230_p6 }
  0x4e   :  { %v148_v32 = vpop.eup %147 }
  0x4f   :  { %v72_v33 = vmul.f32 %v148_v32, %v71_v30 }
  0x51   :  { %v77_v34 = vrot.slane %v72_v33, %v76_v31 }
  0x53   :  { %v78_v36 = vmul.f32 %v77_v34, %v59_v12 }
  0x55   :  { %v85_v37 = vadd.f32 %v141_v35, %v78_v36 }
  0x57   :  { %86 = vst.msk [vmem:[#allocation7] sm:$0xff] %vm50_vm0, %v85_v37 }
  0x58   :  { %240 = shalt.err (!%p237_p10)
}
  0x59   :  { %107 = dma.vmem_to_hbm [thread:$0]  %s105_s28, 128, %s336_s5, [#allocation4]  }
  0x5a   :  { %253 = dma.done.wait [#allocation4], 128  }
  0x5b   :  { %254 = vsyncadd [#allocation4], 4294967168 }
  0x5c   :  { %255 = dma.done.wait [#allocation9], 32  }
  0x5d   :  { %256 = vsyncadd [#allocation9], 4294967264 }
  0x5e   :  { %137 = vsyncpa [#allocation3], 1 }
  0x5f   :  { %138 = vsyncpa [#allocation6], 1 }
  0x60   :  { %139 = vsyncpa [#allocation4], 1 }
  0x61   :  { %140 = vsyncpa [#allocation9], 1 }

</bundles_post_ra>
